<compile_context>
chip_gen: v6e
topology: v6e:2x2x1
jax: 0.10.0
libtpu: 0.0.40
codegen_flags: <defaults>
</compile_context>

<pallas_src>
import functools
import math

import jax
import jax.numpy as jnp
from jax import lax
from jax.experimental import pallas as pl
from jax.experimental.pallas import tpu as pltpu


def _attention_pool_kernel(q_ref, x_ref, o_ref, m_sc, l_sc, acc_sc, *, inv_scale):
    # q_ref:  (C, D)       learned queries, same block every grid step
    # x_ref:  (bb, tT, D)  bb batch elements, one T-chunk (keys == values)
    # o_ref:  (bb, C, D)   output block (written on the last T-chunk only)
    # m_sc:   (bb, C, 1)   running row max        (f32 scratch)
    # l_sc:   (bb, C, 1)   running softmax denom  (f32 scratch)
    # acc_sc: (bb, C, D)   running weighted sum   (f32 scratch)
    kt = pl.program_id(1)

    @pl.when(kt == 0)
    def _init():
        m_sc[...] = jnp.full(m_sc.shape, -jnp.inf, dtype=m_sc.dtype)
        l_sc[...] = jnp.zeros(l_sc.shape, dtype=l_sc.dtype)
        acc_sc[...] = jnp.zeros(acc_sc.shape, dtype=acc_sc.dtype)

    q = q_ref[...]                       # (C, D), kept in input dtype for the MXU
    bb = x_ref.shape[0]
    for b in range(bb):                  # static unroll; bb is small (<= 8)
        xb = x_ref[b]                    # (tT, D)
        # scores = (q @ xb^T) / sqrt(D): contract on D directly, no transpose.
        s = lax.dot_general(
            q, xb, (((1,), (1,)), ((), ())),
            preferred_element_type=jnp.float32) * inv_scale          # (C, tT)
        m_prev = m_sc[b]                                             # (C, 1)
        m_new = jnp.maximum(m_prev, jnp.max(s, axis=-1, keepdims=True))
        alpha = jnp.exp(m_prev - m_new)                              # (C, 1)
        p = jnp.exp(s - m_new)                                       # (C, tT)
        l_sc[b] = alpha * l_sc[b] + jnp.sum(p, axis=-1, keepdims=True)
        acc_sc[b] = alpha * acc_sc[b] + jnp.dot(
            p.astype(xb.dtype), xb, preferred_element_type=jnp.float32)
        m_sc[b] = m_new

    @pl.when(kt == pl.num_programs(1) - 1)
    def _finalize():
        inv_l = pl.reciprocal(l_sc[...], approx=True)   # EUP vrcp, ~free slot
        o_ref[...] = (acc_sc[...] * inv_l).astype(o_ref.dtype)


def _largest_divisor_leq(n, cap, align=1):
    """Largest d with d | n, d <= cap, and (d % align == 0 or d == n).

    Falls back to the full extent n if no aligned divisor exists (a block equal
    to the full dim is always legal w.r.t. the (8, 128) tiling rule).
    """
    cap = max(1, min(cap, n))
    for d in range(cap, 0, -1):
        if n % d == 0 and (d % align == 0 or d == n):
            return d
    return n


def attention_pool(x, query, *, max_block_b=8, max_block_t=1024):
    """x: (B, T, D); query: (C, D) -> (B, C, D). Matches AttentionPool.forward."""
    B, T, D = x.shape
    C, Dq = query.shape
    assert Dq == D, "query feature dim must match x feature dim"
    inv_scale = 1.0 / math.sqrt(float(D))
    itemsize = jnp.dtype(x.dtype).itemsize

    # --- tile selection -------------------------------------------------
    # Keep each x block around <= 4 MiB: the double-buffered working set
    # (2 x-bufs + 2 out-bufs + scratch) then stays under ~10 MiB, safely
    # inside the scoped-VMEM limit on v5e/v6e/v7x while still giving large
    # lane-dense DMAs that sit near the HBM roofline.
    x_block_budget = 4 * 1024 * 1024

    # T chunk: multiple of 8 (sublane tiling) or the full T.
    t_cap = max(1, min(max_block_t, x_block_budget // max(1, D * itemsize)))
    tT = _largest_divisor_leq(T, t_cap, align=8)

    # Batches per grid step: divide B, respect the VMEM budget, and keep
    # >= 2 batch grid steps when B >= 2 so both v7x TensorCores get work.
    bb_cap = max(1, x_block_budget // max(1, tT * D * itemsize))
    bb_cap = min(bb_cap, max_block_b)
    if B >= 2:
        bb_cap = min(bb_cap, B // 2)
    bb = _largest_divisor_leq(B, bb_cap, align=1)

    grid = (B // bb, T // tT)   # reduction (T) axis last

    kernel = functools.partial(_attention_pool_kernel, inv_scale=inv_scale)

    flops = 4 * B * C * T * D                                   # two matmuls
    bytes_accessed = (B * T * D + B * C * D + C * D) * itemsize
    transcendentals = B * C * T                                 # softmax exps

    return pl.pallas_call(
        kernel,
        out_shape=jax.ShapeDtypeStruct((B, C, D), x.dtype),
        grid_spec=pltpu.PrefetchScalarGridSpec(
            num_scalar_prefetch=0,
            grid=grid,
            in_specs=[
                # learned queries: full array, identical block every step
                pl.BlockSpec((C, D), lambda b, kt: (0, 0)),
                # x: bb batch elements x one T-chunk per step
                pl.BlockSpec((bb, tT, D), lambda b, kt: (b, kt, 0)),
            ],
            out_specs=pl.BlockSpec((bb, C, D), lambda b, kt: (b, 0, 0)),
            scratch_shapes=[
                pltpu.VMEM((bb, C, 1), jnp.float32),   # running max
                pltpu.VMEM((bb, C, 1), jnp.float32),   # running denom
                pltpu.VMEM((bb, C, D), jnp.float32),   # running weighted sum
            ],
        ),
        compiler_params=pltpu.CompilerParams(
            dimension_semantics=("parallel", "arbitrary"),
            vmem_limit_bytes=32 * 1024 * 1024,
        ),
        cost_estimate=pl.CostEstimate(
            flops=flops,
            bytes_accessed=bytes_accessed,
            transcendentals=transcendentals,
        ),
    )(query, x)


def attention_pool_ref(x, query):
    """Pure-JAX reference matching the PyTorch forward."""
    B, T, D = x.shape
    scale = math.sqrt(float(D))
    attn = jnp.einsum("cd,btd->bct", query, x) / scale
    attn = jax.nn.softmax(attn, axis=-1)
    return jnp.einsum("bct,btd->bcd", attn, x)


if __name__ == "__main__":
    key = jax.random.PRNGKey(0)
    k_q, k_x = jax.random.split(key)

    # Small shapes consistent with the module's forward: x is (B, T, D).
    B, T, D = 2, 8, 32
    cls_num = 4

    # Deterministic parameter init (stands in for nn.Parameter(torch.randn(...))).
    query = jax.random.normal(k_q, (cls_num, D), dtype=jnp.float32)
    x = jax.random.normal(k_x, (B, T, D), dtype=jnp.float32)

    out = attention_pool(x, query)
    out = jax.block_until_ready(out)

    ref = attention_pool_ref(x, query)
    assert out.shape == (B, cls_num, D)
    # Tolerance covers pl.reciprocal(approx=True) in the softmax denominator
    # (hardware reciprocal estimate, ~1e-4 relative error); all other math is
    # f32 with f32 MXU accumulation.
    assert jnp.allclose(out, ref, atol=5e-3, rtol=5e-3), "mismatch vs reference"

    print("KERNEL_OK")
</pallas_src>

<mosaic_0001>
module attributes {stable_mosaic.version = 11 : i64} {
  func.func @_attention_pool_kernel(%arg0: i32, %arg1: i32, %arg2: memref<4x32xf32, #tpu.memory_space<vmem>>, %arg3: memref<1x8x32xf32, #tpu.memory_space<vmem>>, %arg4: memref<1x4x32xf32, #tpu.memory_space<vmem>>, %arg5: memref<1x4x1xf32, #tpu.memory_space<vmem>>, %arg6: memref<1x4x1xf32, #tpu.memory_space<vmem>>, %arg7: memref<1x4x32xf32, #tpu.memory_space<vmem>>) attributes {dimension_semantics = [#tpu.dimension_semantics<parallel>, #tpu.dimension_semantics<arbitrary>], iteration_bounds = array<i64: 2, 1>, scalar_prefetch = 0 : i64, scratch_operands = 3 : i64, tpu.core_type = #tpu.core_type<tc>, window_params = [{pipeline_mode = #tpu.pipeline_mode<synchronous>, transform_indices = @transform_0, window_bounds = array<i64: 4, 32>}, {transform_indices = @transform_1, window_bounds = array<i64: 1, 8, 32>}, {transform_indices = @transform_2, window_bounds = array<i64: 1, 4, 32>}]} {
    %c0_i32 = arith.constant 0 : i32
    %0 = arith.cmpi eq, %arg1, %c0_i32 : i32
    %1 = arith.extui %0 : i1 to i32
    %c0_i32_0 = arith.constant 0 : i32
    %2 = arith.cmpi ne, %1, %c0_i32_0 : i32
    scf.if %2 {
      %cst_29 = arith.constant 0xFF800000 : f32
      %43 = vector.broadcast %cst_29 : f32 to vector<1x4x1xf32>
      %c0_30 = arith.constant 0 : index
      %c0_31 = arith.constant 0 : index
      %c0_32 = arith.constant 0 : index
      %44 = vector.load %arg5[%c0_30, %c0_31, %c0_32] : memref<1x4x1xf32, #tpu.memory_space<vmem>>, vector<1x4x1xf32>
      tpu.vector_store %arg5[%c0_30, %c0_31, %c0_32], %43 {strides = array<i32>} : memref<1x4x1xf32, #tpu.memory_space<vmem>>, vector<1x4x1xf32>,
      %cst_33 = arith.constant 0.000000e+00 : f32
      %45 = vector.broadcast %cst_33 : f32 to vector<1x4x1xf32>
      %c0_34 = arith.constant 0 : index
      %c0_35 = arith.constant 0 : index
      %c0_36 = arith.constant 0 : index
      %46 = vector.load %arg6[%c0_34, %c0_35, %c0_36] : memref<1x4x1xf32, #tpu.memory_space<vmem>>, vector<1x4x1xf32>
      tpu.vector_store %arg6[%c0_34, %c0_35, %c0_36], %45 {strides = array<i32>} : memref<1x4x1xf32, #tpu.memory_space<vmem>>, vector<1x4x1xf32>,
      %cst_37 = arith.constant 0.000000e+00 : f32
      %47 = vector.broadcast %cst_37 : f32 to vector<1x4x32xf32>
      %c0_38 = arith.constant 0 : index
      %c0_39 = arith.constant 0 : index
      %c0_40 = arith.constant 0 : index
      %48 = vector.load %arg7[%c0_38, %c0_39, %c0_40] : memref<1x4x32xf32, #tpu.memory_space<vmem>>, vector<1x4x32xf32>
      tpu.vector_store %arg7[%c0_38, %c0_39, %c0_40], %47 {strides = array<i32>} : memref<1x4x32xf32, #tpu.memory_space<vmem>>, vector<1x4x32xf32>,
    } else {
    }
    %c0 = arith.constant 0 : index
    %c0_1 = arith.constant 0 : index
    %3 = vector.load %arg2[%c0, %c0_1] : memref<4x32xf32, #tpu.memory_space<vmem>>, vector<4x32xf32>
    %c0_2 = arith.constant 0 : index
    %c0_3 = arith.constant 0 : index
    %c0_4 = arith.constant 0 : index
    %4 = vector.load %arg3[%c0_2, %c0_3, %c0_4] : memref<1x8x32xf32, #tpu.memory_space<vmem>>, vector<1x8x32xf32>
    %5 = vector.shape_cast %4 : vector<1x8x32xf32> to vector<8x32xf32>
    %cst = arith.constant dense<0.000000e+00> : vector<4x8xf32>
    %6 = tpu.matmul %3, %5, %cst {dimension_numbers = #tpu.dot_dimension_numbers<[1], [1], [0], [0], [0, 0, 1, 0], [], []>} : vector<4x32xf32>, vector<8x32xf32>, vector<4x8xf32> -> vector<4x8xf32>
    %cst_5 = arith.constant 0.176776692 : f32
    %7 = vector.broadcast %cst_5 : f32 to vector<4x8xf32>
    %8 = arith.mulf %6, %7 : vector<4x8xf32>
    %c0_6 = arith.constant 0 : index
    %c0_7 = arith.constant 0 : index
    %c0_8 = arith.constant 0 : index
    %9 = vector.load %arg5[%c0_6, %c0_7, %c0_8] : memref<1x4x1xf32, #tpu.memory_space<vmem>>, vector<1x4x1xf32>
    %10 = vector.shape_cast %9 : vector<1x4x1xf32> to vector<4x1xf32>
    %cst_9 = arith.constant dense<0xFF800000> : vector<4xf32>
    %11 = vector.multi_reduction <maximumf>, %8, %cst_9 [1] : vector<4x8xf32> to vector<4xf32>
    %12 = vector.shape_cast %11 : vector<4xf32> to vector<4x1xf32>
    %13 = arith.maximumf %10, %12 : vector<4x1xf32>
    %14 = arith.subf %10, %13 : vector<4x1xf32>
    %15 = math.exp %14 : vector<4x1xf32>
    %16 = vector.broadcast %13 : vector<4x1xf32> to vector<4x8xf32>
    %17 = arith.subf %8, %16 : vector<4x8xf32>
    %18 = math.exp %17 : vector<4x8xf32>
    %c0_10 = arith.constant 0 : index
    %c0_11 = arith.constant 0 : index
    %c0_12 = arith.constant 0 : index
    %19 = vector.load %arg6[%c0_10, %c0_11, %c0_12] : memref<1x4x1xf32, #tpu.memory_space<vmem>>, vector<1x4x1xf32>
    %20 = vector.shape_cast %19 : vector<1x4x1xf32> to vector<4x1xf32>
    %21 = arith.mulf %15, %20 : vector<4x1xf32>
    %cst_13 = arith.constant dense<0.000000e+00> : vector<4xf32>
    %22 = vector.multi_reduction <add>, %18, %cst_13 [1] : vector<4x8xf32> to vector<4xf32>
    %23 = vector.shape_cast %22 : vector<4xf32> to vector<4x1xf32>
    %24 = arith.addf %21, %23 : vector<4x1xf32>
    %c0_14 = arith.constant 0 : index
    %c0_15 = arith.constant 0 : index
    %c0_16 = arith.constant 0 : index
    %25 = vector.load %arg6[%c0_14, %c0_15, %c0_16] : memref<1x4x1xf32, #tpu.memory_space<vmem>>, vector<1x4x1xf32>
    %26 = vector.shape_cast %25 : vector<1x4x1xf32> to vector<4x1xf32>
    %27 = vector.shape_cast %24 : vector<4x1xf32> to vector<1x4x1xf32>
    tpu.vector_store %arg6[%c0_14, %c0_15, %c0_16], %27 {strides = array<i32>} : memref<1x4x1xf32, #tpu.memory_space<vmem>>, vector<1x4x1xf32>,
    %c0_17 = arith.constant 0 : index
    %c0_18 = arith.constant 0 : index
    %c0_19 = arith.constant 0 : index
    %28 = vector.load %arg7[%c0_17, %c0_18, %c0_19] : memref<1x4x32xf32, #tpu.memory_space<vmem>>, vector<1x4x32xf32>
    %29 = vector.shape_cast %28 : vector<1x4x32xf32> to vector<4x32xf32>
    %30 = vector.broadcast %15 : vector<4x1xf32> to vector<4x32xf32>
    %31 = arith.mulf %30, %29 : vector<4x32xf32>
    %cst_20 = arith.constant dense<0.000000e+00> : vector<4x32xf32>
    %32 = tpu.matmul %18, %5, %cst_20 {dimension_numbers = #tpu.dot_dimension_numbers<[1], [0], [0], [1], [0, 0, 1, 1], [], []>} : vector<4x8xf32>, vector<8x32xf32>, vector<4x32xf32> -> vector<4x32xf32>
    %33 = arith.addf %31, %32 : vector<4x32xf32>
    %c0_21 = arith.constant 0 : index
    %c0_22 = arith.constant 0 : index
    %c0_23 = arith.constant 0 : index
    %34 = vector.load %arg7[%c0_21, %c0_22, %c0_23] : memref<1x4x32xf32, #tpu.memory_space<vmem>>, vector<1x4x32xf32>
    %35 = vector.shape_cast %34 : vector<1x4x32xf32> to vector<4x32xf32>
    %36 = vector.shape_cast %33 : vector<4x32xf32> to vector<1x4x32xf32>
    tpu.vector_store %arg7[%c0_21, %c0_22, %c0_23], %36 {strides = array<i32>} : memref<1x4x32xf32, #tpu.memory_space<vmem>>, vector<1x4x32xf32>,
    %c0_24 = arith.constant 0 : index
    %c0_25 = arith.constant 0 : index
    %c0_26 = arith.constant 0 : index
    %37 = vector.load %arg5[%c0_24, %c0_25, %c0_26] : memref<1x4x1xf32, #tpu.memory_space<vmem>>, vector<1x4x1xf32>
    %38 = vector.shape_cast %37 : vector<1x4x1xf32> to vector<4x1xf32>
    %39 = vector.shape_cast %13 : vector<4x1xf32> to vector<1x4x1xf32>
    tpu.vector_store %arg5[%c0_24, %c0_25, %c0_26], %39 {strides = array<i32>} : memref<1x4x1xf32, #tpu.memory_space<vmem>>, vector<1x4x1xf32>,
    %c0_i32_27 = arith.constant 0 : i32
    %40 = arith.cmpi eq, %arg1, %c0_i32_27 : i32
    %41 = arith.extui %40 : i1 to i32
    %c0_i32_28 = arith.constant 0 : i32
    %42 = arith.cmpi ne, %41, %c0_i32_28 : i32
    scf.if %42 {
      %c0_29 = arith.constant 0 : index
      %c0_30 = arith.constant 0 : index
      %c0_31 = arith.constant 0 : index
      %43 = vector.load %arg6[%c0_29, %c0_30, %c0_31] : memref<1x4x1xf32, #tpu.memory_space<vmem>>, vector<1x4x1xf32>
      %44 = tpu.reciprocal %43 {approx = true} : vector<1x4x1xf32> -> vector<1x4x1xf32>
      %c0_32 = arith.constant 0 : index
      %c0_33 = arith.constant 0 : index
      %c0_34 = arith.constant 0 : index
      %45 = vector.load %arg7[%c0_32, %c0_33, %c0_34] : memref<1x4x32xf32, #tpu.memory_space<vmem>>, vector<1x4x32xf32>
      %46 = vector.broadcast %44 : vector<1x4x1xf32> to vector<1x4x32xf32>
      %47 = arith.mulf %45, %46 : vector<1x4x32xf32>
      %c0_35 = arith.constant 0 : index
      %c0_36 = arith.constant 0 : index
      %c0_37 = arith.constant 0 : index
      %48 = vector.load %arg4[%c0_35, %c0_36, %c0_37] : memref<1x4x32xf32, #tpu.memory_space<vmem>>, vector<1x4x32xf32>
      tpu.vector_store %arg4[%c0_35, %c0_36, %c0_37], %47 {strides = array<i32>} : memref<1x4x32xf32, #tpu.memory_space<vmem>>, vector<1x4x32xf32>,
    } else {
    }
    return
  }
  func.func @transform_0(%arg0: i32, %arg1: i32) -> (i32, i32) {
    %c0_i32 = arith.constant 0 : i32
    %c0_i32_0 = arith.constant 0 : i32
    %c0_i32_1 = arith.constant 0 : i32
    return %c0_i32, %c0_i32_0 : i32, i32
  }
  func.func @transform_1(%arg0: i32, %arg1: i32) -> (i32, i32, i32) {
    %c0_i32 = arith.constant 0 : i32
    %c0_i32_0 = arith.constant 0 : i32
    return %arg0, %arg1, %c0_i32 : i32, i32, i32
  }
  func.func @transform_2(%arg0: i32, %arg1: i32) -> (i32, i32, i32) {
    %c0_i32 = arith.constant 0 : i32
    %c0_i32_0 = arith.constant 0 : i32
    %c0_i32_1 = arith.constant 0 : i32
    return %arg0, %c0_i32, %c0_i32_0 : i32, i32, i32
  }
}

</mosaic_0001>

<bundles_post_ra>
// kernel: tpu_custom_call.1
= control target key start
LH: loop header
LB: loop body
LE: loop exit
PB: predicated region body
PF: predicated region fallthrough
CT: control target
= control target key end

     0   :  { %7 = vsyncpa [#allocation6], 0  ;;  %s954_s0 = inlined_call_operand.hbm [shape: f32[4,32], index: 0, kind: input, shape index: {}]   ;;  %s955_s1 = inlined_call_operand.hbm [shape: f32[2,8,32], index: 1, kind: input, shape index: {}]   ;;  %s956_s2 = inlined_call_operand.hbm [shape: f32[2,4,32], index: 2, kind: output, shape index: {}]  }
   0x1   :  { %8 = vsyncpa [#allocation9], 0 }
   0x2   :  { %10 = vsyncpa [#allocation9 + $0x1], 0 }
   0x3   :  { %11 = vsyncpa [#allocation7], 0 }
   0x4   :  { %13 = vsyncpa [#allocation7 + $0x1], 0  ;;  %s783_s9 = smov 0   ;;  %s785_s10 = smov 0  }
   0x5   :  { %s787_s11 = smov 0   ;;  %s789_s12 = smov 0  }
   0x6   :  { %s791_s13 = smov 0   ;;  %s793_s14 = smov 0  }
   0x7 LB: > { %s504_s15 = sadd.s32 4294967295, %s759_s14   ;;  %s505_s16 = sadd.s32 4294967294, %s759_s14   ;;  %s759_s14 = sphi %s793_s14, %s19_s14   ;;  %s755_s13 = sphi %s791_s13, %s973_s13   ;;  %s751_s12 = sphi %s789_s12, %s972_s12   ;;  %s747_s11 = sphi %s787_s11, %s971_s11   ;;  %s743_s10 = sphi %s785_s10, %s970_s10   ;;  %s739_s9 = sphi %s783_s9, %s969_s9  }
   0x8   : > { %p74_p0 = scmp.ne.s32.totalorder %s743_s10, %s739_s9  ;;  %p817_p1 = scmp.eq.s32.totalorder %s504_s15, 0 }
   0x9   : > { %p821_p2 = scmp.eq.s32.totalorder %s504_s15, 1  ;;  %p104_p3 = scmp.eq.s32.totalorder %s505_s16, 1 }
   0xa   : > { %p827_p4 = por %p817_p1, %p74_p0  ;;  %p506_p5 = scmp.ge.s32.totalorder %s759_s14, 1 }
   0xb   : > { %p832_p6 = por %p104_p3, %p74_p0  ;;  %p111_p7 = scmp.lt.s32.totalorder %s759_s14, 3 }
   0xc   : > { %s960_s19 = scalar_select %p827_p4, 1, 0 }
   0xd   : > { %s961_s20 = scalar_select %p832_p6, 1, 0 }
   0xe   : > { %p837_p8 = pnand %p506_p5, %p111_p7  ;;  %s761_s22 = smov [#allocation5]  }
   0xf   : > { %s124_s23 = sshll.u32 %s761_s22, 4  ;;  %s31_s25 = sadd.s32 1, %s755_s13  ;;  %s125_s23 = int_to_ptr.vmem [resolvable:$true] %s124_s23 }
  0x10   : > { %p544_p10 = pneg %p837_p8  ;;  %s61_s26 = sadd.s32 1, %s747_s11 }
  0x11   : > { %p33_p12 = scmp.ge.s32.totalorder %s31_s25, 2  ;;  %s632_s27 = scalar_lea.vmem %s125_s23, 64 }
  0x12   : > { %p846_p11 = pnand %p544_p10, %p817_p1  ;;  %p633_p0 = scmp.ne.s32.totalorder %s125_s23, %s632_s27 }
  0x13   : > { %p640_p7 = scmp.lt.s32.totalorder %s125_s23, %s125_s23  ;;  %p641_p6 = scmp.lt.s32.totalorder %s632_s27, %s632_s27 }
  0x14   : > { %p623_p13 = pneg %p846_p11 }
  0x15   : > { %p642_p9 = por %p641_p6, %p640_p7 }
  0x16   : > { %p635_p3 = pnand %p633_p0, %p623_p13 }
  0x18   : > { %p636_p5 = pneg %p635_p3 }
  0x1a   : > { %p643_p4 = pnand %p642_p9, %p636_p5 }
  0x1c   : > { %646 = shalt.err (!%p643_p4)
}
  0x1d   : > { %547 = dma.hbm_to_vmem [thread:$0]  (!%p846_p11), %s954_s0, 64, %s125_s23, [#allocation6]  }
  0x1e   : > { %s975_s25 = smov (%p33_p12, %s31_s25), 0  ;;  %p68_p6 = scmp.ne.s32.totalorder %s747_s11, %s743_s10 }
  0x1f   : > { %p69_p4 = scmp.eq.s32.totalorder %s759_s14, 0  ;;  %s56_s30 = ssub.s32 %s755_s13, %s975_s25 }
  0x20   : > { %p557_p9 = scmp.lt.s32.totalorder %s759_s14, 2  ;;  %p59_p10 = scmp.eq.s32.totalorder %s56_s30, 0 }
  0x21   : > { %p70_p13 = por %p69_p4, %p68_p6  ;;  %p869_p0 = por %p821_p2, %p68_p6 }
  0x22   : > { %s135_s4 = sand.u32 1, %s747_s11   ;;  %s510_s7 = sshll.u32 %s755_s13, 7 }
  0x23   : > { %s875_s5 = scalar_select %p59_p10, %s747_s11, %s61_s26  }
  0x24   : > { %s509_s6 = sshll.u32 %s135_s4, 3  ;;  %s145_s16 = scalar_lea.hbm %s955_s1, %s510_s7 }
  0x25   : > { %s139_s22 = scalar_lea.vmem [#allocation8], %s509_s6  ;;  %p881_p11 = pnand %p557_p9, %p70_p13 }
  0x26   : > { %s147_s23 = sshll.u32 %s139_s22, 4  ;;  %s136_s18 = scalar_lea.sflag [#allocation9], %s135_s4  ;;  %s148_s23 = int_to_ptr.vmem [resolvable:$true] %s147_s23 }
  0x27   : > { %p649_p2 = pneg %p881_p11  ;;  %s660_s27 = scalar_lea.vmem %s148_s23, 128 }
  0x28   : > { %p661_p12 = scmp.ne.s32.totalorder %s148_s23, %s660_s27  ;;  %s762_s26 = smov [#allocation8]  }
  0x29   : > { %s665_s28 = sshll.u32 %s762_s26, 4  ;;  %s666_s28 = int_to_ptr.vmem [resolvable:$false] %s665_s28 }
  0x2a   : > { %p663_p3 = pnand %p661_p12, %p649_p2  ;;  %s667_s29 = scalar_lea.vmem %s666_s28, 256 }
  0x2b   : > { %p668_p7 = scmp.lt.s32.totalorder %s148_s23, %s666_s28  ;;  %p669_p6 = scmp.lt.s32.totalorder %s667_s29, %s660_s27 }
  0x2c   : > { %p664_p5 = pneg %p663_p3 }
  0x2d   : > { %p670_p4 = por %p669_p6, %p668_p7 }
  0x2f   : > { %p671_p10 = pnand %p670_p4, %p664_p5 }
  0x31   : > { %674 = shalt.err (!%p671_p10)
}
  0x32   : > { %551 = dma.hbm_to_vmem [thread:$0]  (!%p881_p11), %s145_s16, 128, %s148_s23, %s136_s18  }
  0x33   : > { %156 = sbr.rel (%p837_p8) target bundleno = 847 (0x34f), region = 28 }
  0x38   : > { %726 = dma.done.wait (%p817_p1), [#allocation6], 64  }
  0x39   : > { %728 = vsyncadd (%p817_p1), [#allocation6], 4294967232  ;;  %s896_s30 = sand.u32 1, %s743_s10   ;;  %p966_p9 = scmp.ne.s32.totalorder %s960_s19, 0 }
  0x3a   : > { %s513_s4 = sshll.u32 %s896_s30, 3  ;;  %s163_s6 = scalar_lea.sflag [#allocation9], %s896_s30 }
  0x3b   : > { %s166_s7 = scalar_lea.vmem [#allocation8], %s513_s4 }
  0x3c   : > { %730 = dma.done.wait (%p966_p9), %s163_s6, 128  }
  0x3d   : > { %732 = vsyncadd (%p966_p9), %s163_s6, 4294967168  ;;  %v763_v0 = vmov 0.0   ;;  %vm764_vm0 = vmmov 0   ;;  %vm198_vm1 = vcmask 261120   ;;  %v197_v1 = vld [vmem:[%s166_s7] sm:$0xff]  ;;  %vm191_vm2 = vcmask 3072  }
  0x3e   : > { %526 = vmatprep.subr.mxu0 %v763_v0  ;;  %528 = vmatprep.mubr.msk.f32.mxu0 %vm764_vm0, %v763_v0  ;;  %v196_v2 = vld [vmem:[#allocation5] sm:$0xf]  ;;  %v765_v3 = vmov -inf   ;;  %193 = vst.msk [vmem:[#allocation3] sm:$0xf] %vm191_vm2, %v763_v0  ;;  %vm277_vm3 = vcmask 60416  }
  0x3f   : > { %531 = vmatprep.subr.mxu1 %v763_v0  ;;  %533 = vmatprep.mubr.msk.f32.mxu1 %vm764_vm0, %v763_v0  ;;  %192 = vst.msk [vmem:[#allocation2] sm:$0xf] %vm191_vm2, %v765_v3  ;;  %v766_v8 = vmov 0   ;;  %vm308_vm4 = vcmask 64512   ;;  %vm194_vm5 = vcmask 257024   ;;  %s514_s17 = sshll.u32 %s896_s30, 2 }
  0x40   : > { %527 = vmatpush3.xpose.msk.msra.mxu0 %vm198_vm1, %v197_v1  ;;  %532 = vmatpush3.msra.mxu1 %v197_v1  ;;  %195 = vst.msk [vmem:[#allocation4] sm:$0xf] %vm194_vm5, %v763_v0  ;;  %s519_s19 = sshll.u32 %s751_s12, 6  ;;  %s186_s21 = scalar_lea.vmem [#allocation10], %s514_s17 }
  0x41   : > { %613 = vset.pattern.permute.xlu0 %v766_v8  ;;  %614 = vset.pattern.permute.xlu1 %v766_v8  ;;  %s413_s8 = sshll.u32 %s186_s21, 4  ;;  %s411_s22 = scalar_lea.hbm %s956_s2, %s519_s19  ;;  %s414_s8 = int_to_ptr.vmem [resolvable:$true] %s413_s8 }
  0x42   : > { %s400_s23 = scalar_lea.sflag [#allocation7], %s896_s30  ;;  %s675_s24 = scalar_lea.vmem %s414_s8, 64 }
  0x43   : > { %529 = vmatmul.mubr.msk.f32.vlgmr.msra.gmra.mxu0 %vm198_vm1, %v196_v2  ;;  %p676_p1 = scmp.ne.s32.totalorder %s414_s8, %s675_s24  ;;  %s767_s18 = smov [#allocation10]  }
  0x44   : > { %s679_s12 = sshll.u32 %s767_s18, 4  ;;  %s680_s12 = int_to_ptr.vmem [resolvable:$false] %s679_s12 }
  0x45   : > { %v293_v20 = vld [vmem:[#allocation3] sm:$0xf]  ;;  %p677_p8 = pnand %p676_p1, %p869_p0  ;;  %s681_s27 = scalar_lea.vmem %s680_s12, 128 }
  0x46   : > { %v276_v9 = vld [vmem:[#allocation2] sm:$0xf]  ;;  %p682_p11 = scmp.lt.s32.totalorder %s414_s8, %s680_s12  ;;  %p683_p2 = scmp.lt.s32.totalorder %s681_s27, %s675_s24 }
  0x47   : > { %v301_v26 = vld [vmem:[#allocation4] sm:$0xf]  ;;  %p678_p13 = pneg %p677_p8 }
  0x48   : > { %p684_p12 = por %p683_p2, %p682_p11 }
  0x4a   : > { %p685_p3 = pnand %p684_p12, %p678_p13 }
 0x103   : > { %v271_v4 = vpop.f32.mrf.mxu0 }
 0x104   : > { %v275_v5 = vmul.f32 0.17677669, %v271_v4 }
 0x105   : > { %v530_v6 = vpop.f32.mrf.mxu0 }
 0x106   : > { %v278_v7 = vsel %vm277_vm3, %v275_v5, -inf }
 0x107   : > { %279 = vmax.xlane.f32.xlu0 %v278_v7 }
 0x190   : > { %v280_v10 = vpop.xlane.xlu0 %279 }
 0x191   : > { %v281_v11 = vmax.f32 %v276_v9, %v280_v10 }
 0x193   : > { %v282_v12 = vsub.f32 %v276_v9, %v281_v11  ;;  %385 = vst.msk [vmem:[#allocation2] sm:$0xf] %vm191_vm2, %v281_v11  ;;  %287 = vperm.xlu0 %613, %v281_v11  }
 0x195   : > { %v283_v17 = vmul.f32 1.442695, %v282_v12 }
 0x20e   : > { %v288_v13 = vpop.permute.xlu0 %287 }
 0x20f   : > { %v290_v14 = vsub.f32 %v275_v5, %v288_v13 }
 0x211   : > { %v291_v15 = vmul.f32 1.442695, %v290_v14 }
 0x213   : > { %615 = vpow2.f32 %v291_v15 }
 0x214   : > { %617 = vpow2.f32 %v283_v17 }
 0x220   : > { %v616_v16 = vpop.eup %615 }
 0x221   : > { %534 = vmatmul.mubr.msk.f32.vlgmr.msra.gmra.mxu1 %vm308_vm4, %v616_v16  ;;  %v295_v18 = vsel %vm277_vm3, %v616_v16, 0.0  ;;  %v618_v19 = vpop.eup %617 }
 0x222   : > { %296 = vadd.xlane.f32.xlu1 %v295_v18  ;;  %v294_v21 = vmul.f32 %v618_v19, %v293_v20 }
 0x233   : > { %304 = vperm.xlu1 %614, %v618_v19  }
 0x2ab   : > { %v297_v22 = vpop.xlane.xlu1 %296 }
 0x2ac   : > { %v298_v23 = vadd.f32 %v297_v22, %v294_v21 }
 0x2ae   : > { %300 = vst.msk [vmem:[#allocation3] sm:$0xf] %vm191_vm2, %v298_v23 }
 0x2af   : > { %v305_v27 = vpop.permute.xlu1 %304 }
 0x2b0   : > { %v307_v28 = vmul.f32 %v305_v27, %v301_v26 }
 0x2b5   : > { %v389_v24 = vld [vmem:[#allocation3] sm:$0xf] }
 0x2b6   : > { %619 = vrcp.f32 %v389_v24 }
 0x2c3   : > { %v620_v25 = vpop.eup %619 }
 0x2c4   : > { %394 = vperm.xlu1 %614, %v620_v25  }
 0x2e1   : > { %v378_v29 = vpop.f32.mrf.mxu1 }
 0x2e2   : > { %v382_v30 = vadd.f32 %v378_v29, %v307_v28 }
 0x2e3   : > { %v535_v31 = vpop.f32.mrf.mxu1 }
 0x2e4   : > { %384 = vst.msk [vmem:[#allocation4] sm:$0xf] %vm194_vm5, %v382_v30 }
 0x2eb   : > { %v391_v32 = vld [vmem:[#allocation4] sm:$0xf] }
 0x33f   : > { %v395_v33 = vpop.permute.xlu1 %394 }
 0x340   : > { %v397_v34 = vmul.f32 %v395_v33, %v391_v32 }
 0x342   : > { %398 = vst.msk [vmem:[%s186_s21] sm:$0xf] %vm194_vm5, %v397_v34 }
 0x343   : > { %688 = shalt.err (!%p685_p3)
}
 0x344   : > { %s689_s26 = scalar_lea.hbm %s411_s22, 64  ;;  %s693_s30 = scalar_lea.hbm %s956_s2, 128 }
 0x345   : > { %p690_p5 = scmp.ne.s32.totalorder %s411_s22, %s689_s26  ;;  %p694_p4 = scmp.lt.s32.totalorder %s411_s22, %s956_s2 }
 0x346   : > { %p695_p10 = scmp.lt.s32.totalorder %s693_s30, %s689_s26 }
 0x347   : > { %p691_p7 = pnand %p690_p5, %p869_p0 }
 0x348   : > { %p696_p9 = por %p695_p10, %p694_p4 }
 0x349   : > { %p692_p6 = pneg %p691_p7 }
 0x34b   : > { %p697_p1 = pnand %p696_p9, %p692_p6 }
 0x34d   : > { %700 = shalt.err (!%p697_p1)
}
 0x34e   : > { %542 = dma.vmem_to_hbm [thread:$0]  (%p869_p0), %s414_s8, 64, %s411_s22, %s400_s23  }
 0x34f PF: > { %s425_s7 = sand.u32 1, %s739_s9   ;;  %p967_p8 = scmp.ne.s32.totalorder %s961_s20, 0 }
 0x350   : > { %p968_p13 = scmp.ge.s32.totalorder %s759_s14, 2  ;;  %s426_s17 = scalar_lea.sflag [#allocation7], %s425_s7 }
 0x352   : > { %p553_p11 = pnand %p968_p13, %p967_p8 }
 0x354   : > { %p554_p2 = pneg %p553_p11 }
 0x356   : > { %734 = dma.done.wait (%p554_p2), %s426_s17, 64  }
 0x357   : > { %736 = vsyncadd (%p554_p2), %s426_s17, 4294967232  ;;  %s19_s14 = sadd.s32 1, %s759_s14   ;;  %s969_s9 = smov %s743_s10 }
 0x358   : > { %p16_p12 = scmp.ge.s32.totalorder %s19_s14, 4   ;;  %s970_s10 = smov %s747_s11 }
 0x359   : > { %s971_s11 = smov %s875_s5  ;;  %s972_s12 = smov %s755_s13 }
 0x35a   : > { %s973_s13 = smov %s975_s25  ;;  %18 = sbr.rel (!%p16_p12) target bundleno = 7 (0x7), region = 86 }
 0x35f   :  { %431 = vsyncpa [#allocation6], 1 }
 0x360   :  { %433 = vsyncpa [#allocation6 + $0x1], 1 }
 0x361   :  { %434 = vsyncpa [#allocation9], 1 }
 0x362   :  { %436 = vsyncpa [#allocation9 + $0x1], 1 }
 0x363   :  { %437 = vsyncpa [#allocation7], 1 }
 0x364   :  { %439 = vsyncpa [#allocation7 + $0x1], 1 }

</bundles_post_ra>
